<compile_context>
chip_gen: v7x
topology: tpu7x:2x2x1
jax: 0.10.0
libtpu: 0.0.40
codegen_flags: <defaults>
</compile_context>

<pallas_src>
import functools
import math
import warnings

import jax
import jax.numpy as jnp
from jax.experimental import pallas as pl
from jax.experimental.pallas import tpu as pltpu


def _nca_moco_kernel(x_ref, mem_t_ref, labels_ref, y_ref, idx_ref,
                     p_ref, z_ref, *, tk, steps_per_chunk):
    """One grid step = one (B, tk) slab of the similarity matrix.

    Accumulates same-class exp-sims (p) and all exp-sims (z) into lane-dense
    (1, B, 128) f32 output blocks that stay resident across the reduction
    ("arbitrary") grid axis.
    """
    c = pl.program_id(0)            # parallel super-chunk over the queue
    s = pl.program_id(1)            # reduction steps within the chunk
    b = x_ref.shape[0]

    @pl.when(s == 0)
    def _():
        p_ref[...] = jnp.zeros_like(p_ref)
        z_ref[...] = jnp.zeros_like(z_ref)

    # x was pre-scaled by 1/T and cast to bf16 in the wrapper (x is only BxD),
    # so the bf16 MXU matmul directly yields sim / T with an f32 accumulator.
    # sim/T is bounded for L2-normalized x (|sim| <~ 1/T), so exp is safe in
    # f32 without a max-shift — matching the PyTorch reference.
    sim = jnp.dot(x_ref[...], mem_t_ref[...],
                  preferred_element_type=jnp.float32)          # (B, tk) f32

    y = y_ref[...]                                             # (B, 1) i32
    idx = idx_ref[...]                                         # (B, 1) i32
    col0 = (c * steps_per_chunk + s) * tk
    lane = jax.lax.broadcasted_iota(jnp.int32, (b, 128), 1)    # hoisted

    # Per-slice processing keeps vreg pressure bounded (no full-width (B, tk)
    # e/col/same/pe temporaries); a few partial accumulators break the serial
    # VPU add chain.
    # TODO(synk): if profiling shows the EUP exp slot binding at small D on
    # v6e/v7x, switch to a bf16 exp (f32 accumulate) after accuracy checks.
    n_slices = tk // 128
    nacc = min(4, n_slices)
    p_acc = [None] * nacc
    z_acc = [None] * nacc
    for g in range(n_slices):
        sl = slice(g * 128, (g + 1) * 128)
        e_g = jnp.exp(sim[:, sl])                              # (B, 128) f32
        # scatter_(1, indexes.view(-1, 1), 0): zero each row's own queue col.
        e_g = jnp.where(lane + (col0 + g * 128) == idx, 0.0, e_g)
        # same-class mask: labels[indexes[b]] == labels[col]
        pe_g = jnp.where(y == labels_ref[:, sl], e_g, 0.0)
        a = g % nacc
        p_acc[a] = pe_g if p_acc[a] is None else p_acc[a] + pe_g
        z_acc[a] = e_g if z_acc[a] is None else z_acc[a] + e_g

    p_tot = p_acc[0]
    z_tot = z_acc[0]
    for a in range(1, nacc):
        p_tot = p_tot + p_acc[a]
        z_tot = z_tot + z_acc[a]
    p_ref[0] = p_ref[0] + p_tot
    z_ref[0] = z_ref[0] + z_tot


def _tpu_generation_info():
    """Best-effort (physical VMEM bytes, TensorCores per chip)."""
    vmem_bytes = 128 * 1024 * 1024
    num_cores = 1
    info = None
    try:
        info = pltpu.get_tpu_info()
    except Exception:
        info = None
    if info is not None:
        try:
            v = int(getattr(info, "vmem_capacity_bytes", 0) or 0)
            if v > 0:
                vmem_bytes = v
        except Exception:
            pass
        for attr in ("num_cores", "num_tensorcores", "tensorcore_count",
                     "cores_per_chip"):
            try:
                n = int(getattr(info, attr, 0) or 0)
            except Exception:
                n = 0
            if n > 0:
                num_cores = n
                break
    try:
        kind = jax.devices()[0].device_kind.lower()
    except Exception:
        kind = ""
    if "v7" in kind:                      # v7x: 2 TCs/chip, 64 MiB VMEM per TC
        num_cores = max(num_cores, 2)
        vmem_bytes = min(vmem_bytes, 64 * 1024 * 1024)
    num_cores = max(1, min(num_cores, 2))
    vmem_bytes = max(vmem_bytes, 16 * 1024 * 1024)
    return vmem_bytes, num_cores


def _choose_tiling(K, D, vmem_bytes, num_cores):
    """Largest lane-aligned K-tile that fits the VMEM budget and divides K,
    plus a per-TensorCore split of the reduction steps (v7x megacore)."""
    assert K % 128 == 0, "queue size must be a multiple of 128"
    # Queue-stream budget: double-buffered (D, tk) bf16 tile + (1, tk) i32
    # labels tile, capped at 3/8 of physical VMEM (48 MiB v5e/v6e, 24 MiB v7x).
    tile_budget = (vmem_bytes * 3) // 8
    per_col_bytes = 2 * (2 * D + 4)                 # x2 for double buffering
    tk_cap = max(128, tile_budget // per_col_bytes)
    # Keep a handful of reduction steps per core so the DMA pipeline overlaps
    # and the chunk axis can be split across TensorCores.
    min_steps = 4 * max(1, num_cores)
    tk_cap = min(tk_cap, max(128, K // min_steps))

    tk = 128
    for align in (512, 256, 128):       # 512: v5e 4x128 MXUs; 256: v6e/v7x
        cand = min(tk_cap, K)
        cand -= cand % align
        while cand >= align and K % cand != 0:
            cand -= align
        if cand >= align:
            tk = cand
            break

    n_steps = K // tk
    n_chunks = num_cores if (num_cores > 1 and n_steps % num_cores == 0) else 1
    return tk, n_chunks, n_steps // n_chunks


def nca_moco_forward(x, x_hat, indexes, mem_t, labels, *, T=0.07, margin=0.0):
    """NCACrossEntropy_MoCo.forward.

    The module's (K, D) f32 `memory` queue is stored persistently in its
    production layout: a (D, K) bf16 buffer `mem_t` (K on the lane axis), so
    no per-call transpose/cast of the queue is paid.  Returns
    (loss, updated mem_t); donate `mem_t` at the jit boundary so the B-column
    queue update is in-place.
    """
    B, D = x.shape
    Dm, K = mem_t.shape
    assert Dm == D
    vmem_bytes, num_cores = _tpu_generation_info()
    tk, n_chunks, steps_per_chunk = _choose_tiling(K, D, vmem_bytes, num_cores)

    labels_i32 = labels.astype(jnp.int32)
    labels_2d = labels_i32.reshape(1, K)
    idx_i32 = indexes.astype(jnp.int32)
    y = labels_i32[idx_i32].reshape(B, 1)                 # index_select glue
    idx_2d = idx_i32.reshape(B, 1)

    # 1/T folded into the (tiny, B x D) bf16 cast of x.
    x_scaled = (x.astype(jnp.float32) * (1.0 / T)).astype(jnp.bfloat16)

    kernel = functools.partial(_nca_moco_kernel, tk=tk,
                               steps_per_chunk=steps_per_chunk)

    p_part, z_part = pl.pallas_call(
        kernel,
        out_shape=(jax.ShapeDtypeStruct((n_chunks, B, 128), jnp.float32),
                   jax.ShapeDtypeStruct((n_chunks, B, 128), jnp.float32)),
        grid_spec=pltpu.PrefetchScalarGridSpec(
            num_scalar_prefetch=0,
            grid=(n_chunks, steps_per_chunk),
            in_specs=[
                pl.BlockSpec((B, D), lambda c, s: (0, 0)),        # x / T (bf16)
                # TODO(synk): pipeline_mode=pl.Buffered(3) on the queue tile
                # only if a profile shows exposed DMA at very small D / tk.
                pl.BlockSpec((D, tk),                             # queue tile
                             lambda c, s: (0, c * steps_per_chunk + s)),
                # TODO(synk): labels could be int16/int8-packed to shave a few
                # percent of HBM on v5e at small D.
                pl.BlockSpec((1, tk),                             # labels tile
                             lambda c, s: (0, c * steps_per_chunk + s)),
                pl.BlockSpec((B, 1), lambda c, s: (0, 0)),        # labels[idx]
                pl.BlockSpec((B, 1), lambda c, s: (0, 0)),        # indexes
            ],
            out_specs=(pl.BlockSpec((1, B, 128), lambda c, s: (c, 0, 0)),
                       pl.BlockSpec((1, B, 128), lambda c, s: (c, 0, 0))),
        ),
        compiler_params=pltpu.CompilerParams(
            dimension_semantics=("parallel", "arbitrary"),
            vmem_limit_bytes=int(vmem_bytes // 2)),
    )(x_scaled, mem_t, labels_2d, y, idx_2d)

    # Tiny scalar epilogue on (B,) vectors (margin, log, mean) — plain JAX.
    p0 = jnp.sum(p_part, axis=(0, 2))                     # (B,)
    z0 = jnp.sum(z_part, axis=(0, 2))                     # (B,)
    z_exclude = z0 - p0
    p = p0 * (1.0 / math.exp(margin))
    z = z_exclude + p
    prob = p / z
    # masked_select(prob, prob.ne(0)).log().sum()
    contrib = jnp.where(prob != 0.0, jnp.log(prob), 0.0)
    loss = -jnp.sum(contrib) / B

    # memory.index_copy_(0, indexes, x_hat) in the (D, K) bf16 layout: scatter
    # only the B touched columns (in-place when mem_t is donated).  Duplicate
    # indexes have unspecified winner semantics, same as torch index_copy_.
    new_mem_t = mem_t.at[:, idx_i32].set(x_hat.astype(jnp.bfloat16).T)
    return loss, new_mem_t


def reference_forward(x, x_hat, indexes, memory, labels, T=0.07, margin=0.0,
                      bf16_matmul=False):
    """Plain-JAX reference of the PyTorch module (memory in (K, D) f32)."""
    B, _ = x.shape
    K = memory.shape[0]
    if bf16_matmul:
        xs = (x.astype(jnp.float32) * (1.0 / T)).astype(jnp.bfloat16)
        mt = memory.astype(jnp.bfloat16).T
        sim = jnp.dot(xs, mt, preferred_element_type=jnp.float32)
    else:
        sim = jnp.dot(x.astype(jnp.float32), memory.astype(jnp.float32).T,
                      preferred_element_type=jnp.float32) / T
    e = jnp.exp(sim)
    y = labels[indexes].reshape(B, 1)
    same = (y == labels.reshape(1, K)).astype(jnp.float32)
    e = e.at[jnp.arange(B), indexes].set(0.0)
    p = jnp.sum(e * same, axis=1)
    Z = jnp.sum(e, axis=1)
    Z_ex = Z - p
    p = p / math.exp(margin)
    Z = Z_ex + p
    prob = p / Z
    contrib = jnp.where(prob != 0.0, jnp.log(prob), 0.0)
    loss = -jnp.sum(contrib) / B
    new_memory = memory.at[indexes].set(x_hat)
    return loss, new_memory


if __name__ == "__main__":
    # Module hyper-parameters (small, consistent with __init__):
    #   inputSize D=32, queueSize K=outputSize=256, batch B=8, T=0.07, margin=0
    B, D, K = 8, 32, 256
    T, margin = 0.07, 0.0

    key = jax.random.PRNGKey(0)
    k_mem, k_lab, k_x, k_xh, k_idx = jax.random.split(key, 5)

    # memory buffer init: uniform(-stdv, stdv), stdv = 1/sqrt(D/3)
    stdv = 1.0 / math.sqrt(D / 3)
    memory = jax.random.uniform(k_mem, (K, D), jnp.float32, -stdv, stdv)
    labels = jax.random.randint(k_lab, (K,), 0, 10, dtype=jnp.int32)

    x = jax.random.normal(k_x, (B, D), jnp.float32)
    x = x / jnp.linalg.norm(x, axis=1, keepdims=True)
    x_hat = jax.random.normal(k_xh, (B, D), jnp.float32)
    x_hat = x_hat / jnp.linalg.norm(x_hat, axis=1, keepdims=True)

    indexes = jax.random.permutation(k_idx, K)[:B].astype(jnp.int32)

    # One-time conversion of the module's (K, D) f32 queue to its persistent
    # production layout: (D, K) bf16 (hoisted out of the per-call path).
    # TODO(synk): queue could be stored fp8 (v7x) / int8 (v6e) with per-row
    # scales to halve the dominant HBM stream (needs accuracy validation).
    mem_t = jnp.asarray(memory.T, dtype=jnp.bfloat16)

    # References computed BEFORE the call (mem_t is donated / invalidated).
    ref_loss_bf16, ref_memory = reference_forward(
        x, x_hat, indexes, memory, labels, T=T, margin=margin, bf16_matmul=True)
    ref_loss_f32, _ = reference_forward(
        x, x_hat, indexes, memory, labels, T=T, margin=margin, bf16_matmul=False)
    expected_mem_t = jnp.asarray(ref_memory.T, dtype=jnp.bfloat16)

    warnings.filterwarnings("ignore", message="Some donated buffers were not usable")
    fwd = jax.jit(nca_moco_forward, static_argnames=("T", "margin"),
                  donate_argnums=(3,))       # in-place queue update
    loss, new_mem_t = fwd(x, x_hat, indexes, mem_t, labels, T=T, margin=margin)
    loss = jax.block_until_ready(loss)
    new_mem_t = jax.block_until_ready(new_mem_t)

    # Apples-to-apples check: reference using the same bf16 matmul inputs.
    assert jnp.allclose(loss, ref_loss_bf16, rtol=1e-3, atol=1e-5), \
        (loss, ref_loss_bf16)
    # Loose sanity check against full-f32 reference semantics (bf16 drift only).
    assert jnp.allclose(loss, ref_loss_f32, rtol=1e-1), (loss, ref_loss_f32)
    # Queue update check (bf16 cast commutes with transpose/scatter, so exact).
    assert jnp.array_equal(new_mem_t, expected_mem_t), "queue update mismatch"

    print("KERNEL_OK")
</pallas_src>

<mosaic_0001>
module attributes {stable_mosaic.version = 11 : i64} {
  func.func @_nca_moco_kernel(%arg0: i32, %arg1: i32, %arg2: memref<8x32xbf16, #tpu.memory_space<vmem>>, %arg3: memref<32x128xbf16, #tpu.memory_space<vmem>>, %arg4: memref<1x128xi32, #tpu.memory_space<vmem>>, %arg5: memref<8x1xi32, #tpu.memory_space<vmem>>, %arg6: memref<8x1xi32, #tpu.memory_space<vmem>>, %arg7: memref<1x8x128xf32, #tpu.memory_space<vmem>>, %arg8: memref<1x8x128xf32, #tpu.memory_space<vmem>>) attributes {dimension_semantics = [#tpu.dimension_semantics<parallel>, #tpu.dimension_semantics<arbitrary>], iteration_bounds = array<i64: 1, 2>, scalar_prefetch = 0 : i64, scratch_operands = 0 : i64, tpu.core_type = #tpu.core_type<tc>, window_params = [{pipeline_mode = #tpu.pipeline_mode<synchronous>, transform_indices = @transform_0, window_bounds = array<i64: 8, 32>}, {transform_indices = @transform_1, window_bounds = array<i64: 32, 128>}, {transform_indices = @transform_2, window_bounds = array<i64: 1, 128>}, {pipeline_mode = #tpu.pipeline_mode<synchronous>, transform_indices = @transform_3, window_bounds = array<i64: 8, 1>}, {pipeline_mode = #tpu.pipeline_mode<synchronous>, transform_indices = @transform_4, window_bounds = array<i64: 8, 1>}, {transform_indices = @transform_5, window_bounds = array<i64: 1, 8, 128>}, {transform_indices = @transform_6, window_bounds = array<i64: 1, 8, 128>}]} {
    %c0_i32 = arith.constant 0 : i32
    %0 = arith.cmpi eq, %arg1, %c0_i32 : i32
    %1 = arith.extui %0 : i1 to i32
    %c0_i32_0 = arith.constant 0 : i32
    %2 = arith.cmpi ne, %1, %c0_i32_0 : i32
    scf.if %2 {
      %cst_25 = arith.constant 0.000000e+00 : f32
      %38 = vector.broadcast %cst_25 : f32 to vector<1x8x128xf32>
      %c0_26 = arith.constant 0 : index
      %c0_27 = arith.constant 0 : index
      %c0_28 = arith.constant 0 : index
      %39 = vector.load %arg7[%c0_26, %c0_27, %c0_28] : memref<1x8x128xf32, #tpu.memory_space<vmem>>, vector<1x8x128xf32>
      tpu.vector_store %arg7[%c0_26, %c0_27, %c0_28], %38 {strides = array<i32>} : memref<1x8x128xf32, #tpu.memory_space<vmem>>, vector<1x8x128xf32>,
      %cst_29 = arith.constant 0.000000e+00 : f32
      %40 = vector.broadcast %cst_29 : f32 to vector<1x8x128xf32>
      %c0_30 = arith.constant 0 : index
      %c0_31 = arith.constant 0 : index
      %c0_32 = arith.constant 0 : index
      %41 = vector.load %arg8[%c0_30, %c0_31, %c0_32] : memref<1x8x128xf32, #tpu.memory_space<vmem>>, vector<1x8x128xf32>
      tpu.vector_store %arg8[%c0_30, %c0_31, %c0_32], %40 {strides = array<i32>} : memref<1x8x128xf32, #tpu.memory_space<vmem>>, vector<1x8x128xf32>,
    } else {
    }
    %c0 = arith.constant 0 : index
    %c0_1 = arith.constant 0 : index
    %3 = vector.load %arg2[%c0, %c0_1] : memref<8x32xbf16, #tpu.memory_space<vmem>>, vector<8x32xbf16>
    %c0_2 = arith.constant 0 : index
    %c0_3 = arith.constant 0 : index
    %4 = vector.load %arg3[%c0_2, %c0_3] : memref<32x128xbf16, #tpu.memory_space<vmem>>, vector<32x128xbf16>
    %cst = arith.constant dense<0.000000e+00> : vector<8x128xf32>
    %5 = tpu.matmul %3, %4, %cst {dimension_numbers = #tpu.dot_dimension_numbers<[1], [0], [0], [1], [0, 0, 1, 1], [], []>} : vector<8x32xbf16>, vector<32x128xbf16>, vector<8x128xf32> -> vector<8x128xf32>
    %c0_4 = arith.constant 0 : index
    %c0_5 = arith.constant 0 : index
    %6 = vector.load %arg5[%c0_4, %c0_5] : memref<8x1xi32, #tpu.memory_space<vmem>>, vector<8x1xi32>
    %c0_6 = arith.constant 0 : index
    %c0_7 = arith.constant 0 : index
    %7 = vector.load %arg6[%c0_6, %c0_7] : memref<8x1xi32, #tpu.memory_space<vmem>>, vector<8x1xi32>
    %c2_i32 = arith.constant 2 : i32
    %8 = arith.muli %arg0, %c2_i32 : i32
    %9 = arith.addi %8, %arg1 : i32
    %c128_i32 = arith.constant 128 : i32
    %10 = arith.muli %9, %c128_i32 : i32
    %11 = tpu.iota {dimensions = array<i32: 1>} : vector<8x128xi32>
    %12 = math.exp %5 : vector<8x128xf32>
    %c0_i32_8 = arith.constant 0 : i32
    %13 = arith.addi %10, %c0_i32_8 : i32
    %14 = vector.broadcast %13 : i32 to vector<8x128xi32>
    %15 = arith.addi %11, %14 : vector<8x128xi32>
    %16 = vector.broadcast %7 : vector<8x1xi32> to vector<8x128xi32>
    %17 = arith.cmpi eq, %15, %16 : vector<8x128xi32>
    %cst_9 = arith.constant 0.000000e+00 : f32
    %18 = vector.broadcast %cst_9 : f32 to vector<8x128xf32>
    %19 = arith.select %17, %18, %12 : vector<8x128xi1>, vector<8x128xf32>
    %c0_10 = arith.constant 0 : index
    %c0_11 = arith.constant 0 : index
    %20 = vector.load %arg4[%c0_10, %c0_11] : memref<1x128xi32, #tpu.memory_space<vmem>>, vector<1x128xi32>
    %21 = vector.broadcast %6 : vector<8x1xi32> to vector<8x128xi32>
    %22 = vector.broadcast %20 : vector<1x128xi32> to vector<8x128xi32>
    %23 = arith.cmpi eq, %21, %22 : vector<8x128xi32>
    %cst_12 = arith.constant 0.000000e+00 : f32
    %24 = vector.broadcast %cst_12 : f32 to vector<8x128xf32>
    %25 = arith.select %23, %19, %24 : vector<8x128xi1>, vector<8x128xf32>
    %c0_13 = arith.constant 0 : index
    %c0_14 = arith.constant 0 : index
    %c0_15 = arith.constant 0 : index
    %26 = vector.load %arg7[%c0_13, %c0_14, %c0_15] : memref<1x8x128xf32, #tpu.memory_space<vmem>>, vector<1x8x128xf32>
    %27 = vector.shape_cast %26 : vector<1x8x128xf32> to vector<8x128xf32>
    %28 = arith.addf %27, %25 : vector<8x128xf32>
    %c0_16 = arith.constant 0 : index
    %c0_17 = arith.constant 0 : index
    %c0_18 = arith.constant 0 : index
    %29 = vector.load %arg7[%c0_16, %c0_17, %c0_18] : memref<1x8x128xf32, #tpu.memory_space<vmem>>, vector<1x8x128xf32>
    %30 = vector.shape_cast %29 : vector<1x8x128xf32> to vector<8x128xf32>
    %31 = vector.shape_cast %28 : vector<8x128xf32> to vector<1x8x128xf32>
    tpu.vector_store %arg7[%c0_16, %c0_17, %c0_18], %31 {strides = array<i32>} : memref<1x8x128xf32, #tpu.memory_space<vmem>>, vector<1x8x128xf32>,
    %c0_19 = arith.constant 0 : index
    %c0_20 = arith.constant 0 : index
    %c0_21 = arith.constant 0 : index
    %32 = vector.load %arg8[%c0_19, %c0_20, %c0_21] : memref<1x8x128xf32, #tpu.memory_space<vmem>>, vector<1x8x128xf32>
    %33 = vector.shape_cast %32 : vector<1x8x128xf32> to vector<8x128xf32>
    %34 = arith.addf %33, %19 : vector<8x128xf32>
    %c0_22 = arith.constant 0 : index
    %c0_23 = arith.constant 0 : index
    %c0_24 = arith.constant 0 : index
    %35 = vector.load %arg8[%c0_22, %c0_23, %c0_24] : memref<1x8x128xf32, #tpu.memory_space<vmem>>, vector<1x8x128xf32>
    %36 = vector.shape_cast %35 : vector<1x8x128xf32> to vector<8x128xf32>
    %37 = vector.shape_cast %34 : vector<8x128xf32> to vector<1x8x128xf32>
    tpu.vector_store %arg8[%c0_22, %c0_23, %c0_24], %37 {strides = array<i32>} : memref<1x8x128xf32, #tpu.memory_space<vmem>>, vector<1x8x128xf32>,
    return
  }
  func.func @transform_0(%arg0: i32, %arg1: i32) -> (i32, i32) {
    %c0_i32 = arith.constant 0 : i32
    %c0_i32_0 = arith.constant 0 : i32
    %c0_i32_1 = arith.constant 0 : i32
    return %c0_i32, %c0_i32_0 : i32, i32
  }
  func.func @transform_1(%arg0: i32, %arg1: i32) -> (i32, i32) {
    %c2_i32 = arith.constant 2 : i32
    %0 = arith.muli %arg0, %c2_i32 : i32
    %1 = arith.addi %0, %arg1 : i32
    %c0_i32 = arith.constant 0 : i32
    %c0_i32_0 = arith.constant 0 : i32
    return %c0_i32, %1 : i32, i32
  }
  func.func @transform_2(%arg0: i32, %arg1: i32) -> (i32, i32) {
    %c2_i32 = arith.constant 2 : i32
    %0 = arith.muli %arg0, %c2_i32 : i32
    %1 = arith.addi %0, %arg1 : i32
    %c0_i32 = arith.constant 0 : i32
    %c0_i32_0 = arith.constant 0 : i32
    return %c0_i32, %1 : i32, i32
  }
  func.func @transform_3(%arg0: i32, %arg1: i32) -> (i32, i32) {
    %c0_i32 = arith.constant 0 : i32
    %c0_i32_0 = arith.constant 0 : i32
    %c0_i32_1 = arith.constant 0 : i32
    return %c0_i32, %c0_i32_0 : i32, i32
  }
  func.func @transform_4(%arg0: i32, %arg1: i32) -> (i32, i32) {
    %c0_i32 = arith.constant 0 : i32
    %c0_i32_0 = arith.constant 0 : i32
    %c0_i32_1 = arith.constant 0 : i32
    return %c0_i32, %c0_i32_0 : i32, i32
  }
  func.func @transform_5(%arg0: i32, %arg1: i32) -> (i32, i32, i32) {
    %c0_i32 = arith.constant 0 : i32
    %c0_i32_0 = arith.constant 0 : i32
    %c0_i32_1 = arith.constant 0 : i32
    return %arg0, %c0_i32, %c0_i32_0 : i32, i32, i32
  }
  func.func @transform_6(%arg0: i32, %arg1: i32) -> (i32, i32, i32) {
    %c0_i32 = arith.constant 0 : i32
    %c0_i32_0 = arith.constant 0 : i32
    %c0_i32_1 = arith.constant 0 : i32
    return %arg0, %c0_i32, %c0_i32_0 : i32, i32, i32
  }
}

</mosaic_0001>

<bundles_post_ra>
// kernel: nca_moco_forward.1
= control target key start
LH: loop header
LB: loop body
LE: loop exit
PB: predicated region body
PF: predicated region fallthrough
CT: control target
= control target key end

     0   :  { %s1371_s0 = inlined_call_operand.hbm [shape: bf16[8,32], index: 0, kind: input, shape index: {}]   ;;  %s1372_s1 = inlined_call_operand.hbm [shape: bf16[32,256], index: 1, kind: input, shape index: {}]   ;;  %s1373_s2 = inlined_call_operand.hbm [shape: s32[1,256], index: 2, kind: input, shape index: {}]   ;;  %s1374_s3 = inlined_call_operand.hbm [shape: s32[8,1], index: 3, kind: input, shape index: {}]   ;;  %s1375_s4 = inlined_call_operand.hbm [shape: s32[8,1], index: 4, kind: input, shape index: {}]   ;;  %s1376_s5 = inlined_call_operand.hbm [shape: f32[1,8,128], index: 5, kind: output, shape index: {0}]   ;;  %s1377_s6 = inlined_call_operand.hbm [shape: f32[1,8,128], index: 6, kind: output, shape index: {1}]  }
   0x1   :  { %1388 = sst [smem:[#allocation21_spill]] %s1372_s1 }
   0x2   :  { %1389 = sst [smem:[#allocation22_spill]] %s1374_s3 }
   0x3   :  { %12 = vsyncpa [#allocation3], 0 }
   0x4   :  { %13 = vsyncpa [#allocation6], 0 }
   0x5   :  { %15 = vsyncpa [#allocation6 + $0x1], 0 }
   0x6   :  { %16 = vsyncpa [#allocation9], 0 }
   0x7   :  { %17 = vsyncpa [#allocation4], 0 }
   0x8   :  { %18 = vsyncpa [#allocation13], 0  ;;  %s1078_s21 = smov 0   ;;  %s1080_s22 = smov 0  }
   0x9   :  { %s1082_s23 = smov 0   ;;  %s1084_s24 = smov 0  }
   0xa   :  { %s1086_s25 = smov 0   ;;  %s1088_s26 = smov 0  }
   0xb LB: > { %s1107_s27 = sadd.s32 4294967295, %s1027_s26   ;;  %s68_s28 = sadd.s32 1, %s1015_s23  ;;  %s1027_s26 = sphi %s1088_s26, %s24_s26   ;;  %s1023_s25 = sphi %s1086_s25, %s1417_s25   ;;  %s1019_s24 = sphi %s1084_s24, %s1416_s24   ;;  %s1015_s23 = sphi %s1082_s23, %s1415_s23   ;;  %s1011_s22 = sphi %s1080_s22, %s1414_s22   ;;  %s1007_s21 = sphi %s1078_s21, %s1413_s21  }
   0xc   : > { %p75_p0 = scmp.ne.s32.totalorder %s1015_s23, %s1011_s22  ;;  %p76_p1 = scmp.eq.s32.totalorder %s1027_s26, 0 }
   0xd   : > { %p81_p2 = scmp.ne.s32.totalorder %s1011_s22, %s1007_s21  ;;  %p1378_p3 = scmp.eq.s32.totalorder %s1107_s27, 0 }
   0xe   : > { %p77_p4 = por %p76_p1, %p75_p0  ;;  %p612_p5 = scmp.ge.s32.totalorder %s1027_s26, 1 }
   0xf   : > { %p1118_p6 = por %p1378_p3, %p81_p2  ;;  %p216_p7 = scmp.lt.s32.totalorder %s1027_s26, 3 }
  0x10   : > { %s1029_s7 = smov [#allocation8]   ;;  %p692_p10 = scmp.lt.s32.totalorder %s1027_s26, 2 }
  0x11   : > { %s1390_s29 = scalar_select %p1118_p6, 1, 0 }
  0x12   : > { %p1123_p8 = pnand %p612_p5, %p216_p7  ;;  %s240_s8 = sshll.u32 %s1029_s7, 4  ;;  %s241_s8 = int_to_ptr.vmem [resolvable:$true] %s240_s8 }
  0x13   : > { %s262_s9 = sand.u32 1, %s1027_s26   ;;  %p1137_p12 = pnand %p692_p10, %p77_p4 }
  0x14   : > { %s1391_s30 = scalar_select %p1123_p8, 1, 0 }
  0x15   : > { %p672_p9 = pneg %p1123_p8  ;;  %s1394_s3 = sld [smem:[#allocation22_spill]] }
  0x16   : > { %s1393_s11 = scalar_select %p1137_p12, 1, 0 }
  0x17   : > { %p1133_p11 = pnand %p672_p9, %p1378_p3 }
  0x19   : > { %s1392_s10 = scalar_select %p1133_p11, 1, 0 }
  0x1a   : > { %p1149_p0 = pneg %p1133_p11 }
  0x1b   : > { %s765_s14 = scalar_lea.hbm %s1394_s3, 128 }
  0x1c   : > { %p766_p13 = scmp.ne.s32.totalorder %s1394_s3, %s765_s14  ;;  %p772_p4 = scmp.lt.u32.totalorder %s765_s14, %s1394_s3 }
  0x1e   : > { %p768_p1 = pnand %p1149_p0, %p766_p13 }
  0x20   : > { %p769_p2 = pneg %p768_p1 }
  0x22   : > { %p774_p5 = pnand %p772_p4, %p769_p2 }
  0x24   : > { %777 = shalt.err (!%p774_p5)
}
  0x25   : > { %s778_s20 = scalar_lea.vmem %s241_s8, 128  ;;  %p786_p3 = scmp.lt.s32.totalorder %s241_s8, %s241_s8 }
  0x26   : > { %p779_p7 = scmp.ne.s32.totalorder %s241_s8, %s778_s20  ;;  %p787_p6 = scmp.lt.s32.totalorder %s778_s20, %s778_s20 }
  0x28   : > { %p781_p9 = pnand %p779_p7, %p1149_p0  ;;  %p788_p8 = por %p787_p6, %p786_p3 }
  0x2a   : > { %p782_p10 = pneg %p781_p9 }
  0x2c   : > { %p789_p12 = pnand %p788_p8, %p782_p10 }
  0x2e   : > { %792 = shalt.err (!%p789_p12)
}
  0x2f   : > { %678 = dma.hbm_to_vmem [thread:$0]  (!%p1133_p11), %s1394_s3, 128, %s241_s8, [#allocation9]  }
  0x30   : > { %s33_s12 = sadd.s32 1, %s1023_s25  ;;  %s1382_s13 = sand.u32 1, %s1015_s23  }
  0x31   : > { %p34_p3 = scmp.ge.s32.totalorder %s33_s12, 2  ;;  %s617_s14 = sshll.u32 %s1382_s13, 4 }
  0x32   : > { %s618_s15 = sshll.u32 %s1023_s25, 6  ;;  %s1397_s1 = sld [smem:[#allocation21_spill]] }
  0x33   : > { %s1419_s12 = smov (%p34_p3, %s33_s12), 0  ;;  %s266_s8 = scalar_lea.vmem [#allocation5], %s617_s14 }
  0x34   : > { %1396 = sst [smem:[#allocation19_spill]] %s1419_s12  ;;  %s274_s20 = sshll.u32 %s266_s8, 4  ;;  %s1179_s20 = int_to_ptr.vmem [resolvable:$true] %s274_s20 }
  0x35   : > { %s65_s21 = ssub.s32 %s1023_s25, %s1419_s12  ;;  %s1188_s13 = scalar_lea.sflag [#allocation6], %s262_s9 }
  0x36   : > { %p66_p6 = scmp.eq.s32.totalorder %s65_s21, 0  ;;  %p1399_p12 = scmp.ne.s32.totalorder %s1393_s11, 0 }
  0x38   : > { %s1175_s19 = scalar_lea.hbm %s1397_s1, %s618_s15  ;;  %p1386_p13 = pneg %p1399_p12 }
  0x39   : > { %s1184_s7 = scalar_select %p66_p6, %s1015_s23, %s68_s28  }
  0x3a   : > { %s793_s16 = scalar_lea.hbm %s1175_s19, 256  ;;  %s798_s18 = scalar_lea.hbm %s1397_s1, 512 }
  0x3b   : > { %1398 = sst [smem:[#allocation20_spill]] %s1184_s7  ;;  %p794_p8 = scmp.ne.s32.totalorder %s1175_s19, %s793_s16 }
  0x3c   : > { %p799_p4 = scmp.lt.u32.totalorder %s1175_s19, %s1397_s1  ;;  %p800_p5 = scmp.lt.u32.totalorder %s798_s18, %s793_s16 }
  0x3d   : > { %p796_p1 = pnand %p1386_p13, %p794_p8  ;;  %p802_p9 = scmp.lt.u32.totalorder %s793_s16, %s1175_s19 }
  0x3e   : > { %p801_p7 = por %p800_p5, %p799_p4 }
  0x3f   : > { %p797_p2 = pneg %p796_p1 }
  0x40   : > { %p803_p10 = por %p802_p9, %p801_p7 }
  0x42   : > { %p804_p3 = pnand %p803_p10, %p797_p2 }
  0x44   : > { %807 = shalt.err (!%p804_p3)
}
  0x45   : > { %s808_s28 = scalar_lea.vmem %s1179_s20, 256  ;;  %s1030_s9 = smov [#allocation5]  }
  0x46   : > { %p809_p6 = scmp.ne.s32.totalorder %s1179_s20, %s808_s28  ;;  %s813_s14 = sshll.u32 %s1030_s9, 4  ;;  %s814_s14 = int_to_ptr.vmem [resolvable:$false] %s813_s14 }
  0x47   : > { %s815_s15 = scalar_lea.vmem %s814_s14, 512  ;;  %p816_p11 = scmp.lt.s32.totalorder %s1179_s20, %s814_s14 }
  0x48   : > { %p811_p8 = pnand %p809_p6, %p1386_p13  ;;  %p817_p4 = scmp.lt.s32.totalorder %s815_s15, %s808_s28 }
  0x4a   : > { %p812_p1 = pneg %p811_p8  ;;  %p818_p5 = por %p817_p4, %p816_p11 }
  0x4c   : > { %p819_p7 = pnand %p818_p5, %p812_p1 }
  0x4e   : > { %822 = shalt.err (!%p819_p7)
}
  0x4f   : > { %s1031_s16 = smov 128   ;;  %s1032_s18 = smov 64  }
  0x50   : > { %s1033_s8 = smov 4   ;;  %s1034_s21 = smov [#allocation2]  }
  0x51   : > { %685 = dma.hbm_to_vmem [thread:$0]  (!%p1399_p12), %s1175_s19, 256, %s1179_s20, %s1188_s13, %s1031_s16, %s1032_s18, %s1033_s8  }
  0x52   : > { %s229_s1 = sshll.u32 %s1034_s21, 4  ;;  %s823_s28 = scalar_lea.hbm %s1371_s0, 64  ;;  %s230_s1 = int_to_ptr.vmem [resolvable:$true] %s229_s1 }
  0x53   : > { %p824_p11 = scmp.ne.s32.totalorder %s1371_s0, %s823_s28  ;;  %p830_p10 = scmp.lt.u32.totalorder %s823_s28, %s1371_s0 }
  0x55   : > { %p826_p2 = pnand %p824_p11, %p1149_p0 }
  0x57   : > { %p827_p9 = pneg %p826_p2 }
  0x59   : > { %p832_p3 = pnand %p830_p10, %p827_p9 }
  0x5b   : > { %835 = shalt.err (!%p832_p3)
}
  0x5c   : > { %s836_s19 = scalar_lea.vmem %s230_s1, 64  ;;  %p844_p4 = scmp.lt.s32.totalorder %s230_s1, %s230_s1 }
  0x5d   : > { %p837_p6 = scmp.ne.s32.totalorder %s230_s1, %s836_s19  ;;  %p845_p5 = scmp.lt.s32.totalorder %s836_s19, %s836_s19 }
  0x5f   : > { %p839_p8 = pnand %p837_p6, %p1149_p0  ;;  %p846_p7 = por %p845_p5, %p844_p4 }
  0x61   : > { %p840_p1 = pneg %p839_p8 }
  0x63   : > { %p847_p13 = pnand %p846_p7, %p840_p1 }
  0x65   : > { %850 = shalt.err (!%p847_p13)
}
  0x66   : > { %p1400_p11 = scmp.ne.s32.totalorder %s1392_s10, 0  ;;  %s1035_s12 = smov [#allocation10]  }
  0x67   : > { %s251_s7 = sshll.u32 %s1035_s12, 4  ;;  %s619_s16 = sshll.u32 %s1023_s25, 4  ;;  %s252_s7 = int_to_ptr.vmem [resolvable:$true] %s251_s7 }
  0x68   : > { %675 = dma.hbm_to_vmem [thread:$0]  (!%p1400_p11), %s1371_s0, 64, %s230_s1, [#allocation3]  }
  0x69   : > { %s851_s21 = scalar_lea.hbm %s1375_s4, 128 }
  0x6a   : > { %p852_p13 = scmp.ne.s32.totalorder %s1375_s4, %s851_s21  ;;  %p858_p10 = scmp.lt.u32.totalorder %s851_s21, %s1375_s4 }
  0x6c   : > { %p854_p2 = pnand %p852_p13, %p1149_p0 }
  0x6e   : > { %p855_p9 = pneg %p854_p2 }
  0x70   : > { %p860_p3 = pnand %p858_p10, %p855_p9 }
  0x72   : > { %863 = shalt.err (!%p860_p3)
}
  0x73   : > { %s864_s1 = scalar_lea.vmem %s252_s7, 128  ;;  %p872_p4 = scmp.lt.s32.totalorder %s252_s7, %s252_s7 }
  0x74   : > { %p865_p6 = scmp.ne.s32.totalorder %s252_s7, %s864_s1  ;;  %p873_p5 = scmp.lt.s32.totalorder %s864_s1, %s864_s1 }
  0x76   : > { %p867_p8 = pnand %p865_p6, %p1149_p0  ;;  %p874_p7 = por %p873_p5, %p872_p4 }
  0x78   : > { %p868_p1 = pneg %p867_p8 }
  0x7a   : > { %p875_p12 = pnand %p874_p7, %p868_p1 }
  0x7c   : > { %878 = shalt.err (!%p875_p12)
}
  0x7d   : > { %681 = dma.hbm_to_vmem [thread:$0]  (!%p1400_p11), %s1375_s4, 128, %s252_s7, [#allocation9]  }
  0x7e   : > { %s1256_s18 = scalar_lea.hbm %s1373_s2, %s619_s16  ;;  %s1401_s17 = sand.u32 1, %s1015_s23  }
  0x7f   : > { %s287_s8 = scalar_lea.vmem [#allocation7], %s1401_s17  ;;  %s879_s10 = scalar_lea.hbm %s1256_s18, 16 }
  0x80   : > { %s296_s21 = sshll.u32 %s287_s8, 4  ;;  %p880_p0 = scmp.ne.s32.totalorder %s1256_s18, %s879_s10  ;;  %s297_s21 = int_to_ptr.vmem [resolvable:$true] %s296_s21 }
  0x81   : > { %p1402_p12 = scmp.ne.s32.totalorder %s1393_s11, 0  ;;  %s884_s28 = scalar_lea.hbm %s1373_s2, 32 }
  0x82   : > { %p885_p11 = scmp.lt.u32.totalorder %s1256_s18, %s1373_s2  ;;  %p886_p10 = scmp.lt.u32.totalorder %s884_s28, %s879_s10 }
  0x83   : > { %p1403_p13 = pneg %p1402_p12  ;;  %p888_p6 = scmp.lt.u32.totalorder %s879_s10, %s1256_s18 }
  0x84   : > { %p887_p3 = por %p886_p10, %p885_p11 }
  0x85   : > { %p882_p2 = pnand %p880_p0, %p1403_p13 }
  0x86   : > { %p889_p8 = por %p888_p6, %p887_p3 }
  0x87   : > { %p883_p9 = pneg %p882_p2 }
  0x89   : > { %p890_p1 = pnand %p889_p8, %p883_p9 }
  0x8b   : > { %893 = shalt.err (!%p890_p1)
}
  0x8c   : > { %s894_s15 = scalar_lea.vmem %s297_s21, 16  ;;  %p1404_p5 = pmov %p1403_p13 }
  0x8d   : > { %p895_p4 = scmp.ne.s32.totalorder %s297_s21, %s894_s15  ;;  %s1036_s1 = smov [#allocation7]  }
  0x8e   : > { %s899_s19 = sshll.u32 %s1036_s1, 4  ;;  %s900_s19 = int_to_ptr.vmem [resolvable:$false] %s899_s19 }
  0x8f   : > { %p897_p7 = pnand %p895_p4, %p1404_p5  ;;  %s901_s3 = scalar_lea.vmem %s900_s19, 32 }
  0x90   : > { %p902_p13 = scmp.lt.s32.totalorder %s297_s21, %s900_s19  ;;  %p903_p2 = scmp.lt.s32.totalorder %s901_s3, %s894_s15 }
  0x91   : > { %p898_p0 = pneg %p897_p7 }
  0x92   : > { %p904_p10 = por %p903_p2, %p902_p13 }
  0x94   : > { %p905_p11 = pnand %p904_p10, %p898_p0 }
  0x96   : > { %908 = shalt.err (!%p905_p11)
}
  0x97   : > { %688 = dma.hbm_to_vmem [thread:$0]  (!%p1402_p12), %s1256_s18, 16, %s297_s21, %s1188_s13  }
  0x98   : > { %p1405_p9 = scmp.ne.s32.totalorder %s1391_s30, 0 }
  0x99   : > { %p1406_p3 = scmp.eq.s32.totalorder (!%p1405_p9), %s1107_s27, 0 }
  0x9a   : > { %305 = sbr.rel (%p1405_p9) target bundleno = 455 (0x1c7), region = 40 }
  0xa1   : > { %986 = dma.done.wait (%p1406_p3), [#allocation3], 64   ;;  %p1407_p6 = pmov %p1406_p3 }
  0xa2   : > { %s311_s20 = sand.u32 1, %s1107_s27   ;;  %s313_s12 = sand.u32 1, %s1011_s22  }
  0xa3   : > { %988 = vsyncadd (%p1407_p6), [#allocation3], 4294967232  ;;  %s622_s17 = sshll.u32 %s313_s12, 4  ;;  %s312_s8 = scalar_lea.sflag [#allocation6], %s311_s20 }
  0xa4   : > { %s315_s11 = scalar_lea.vmem [#allocation5], %s622_s17  ;;  %p1408_p8 = scmp.ne.s32.totalorder %s1390_s29, 0 }
  0xa6   : > { %990 = dma.done.wait (%p1408_p8), %s312_s8, 272  }
  0xa7   : > { %992 = vsyncadd (%p1408_p8), %s312_s8, 4294967024  ;;  %s1292_s30 = scalar_lea.vmem [#allocation7], %s313_s12  ;;  %p1409_p12 = pmov %p1406_p3 }
  0xa8   : > { %p1410_p1 = pmov %p1406_p3 }
  0xa9   : > { %994 = dma.done.wait (%p1409_p12), [#allocation9], 256  }
  0xaa   : > { %996 = vsyncadd (%p1410_p1), [#allocation9], 4294967040  ;;  %p625_p4 = scmp.ne.s32.totalorder %s1019_s24, 0 }
  0xab   : > { %v1037_v0 = vmov (!%p625_p4), 0.0  }
  0xac   : > { %367 = sbr.rel (%p625_p4) target bundleno = 179 (0xb3), region = 64  ;;  %368 = vst [vmem:[#allocation11] sm:$0xff] (!%p625_p4), %v1037_v0  ;;  %369 = vst [vmem:[#allocation12] sm:$0xff] (!%p625_p4), %v1037_v0 }
  0xb3 PF: > { %v761_v1 = vld [vmem:[%s315_s11] sm:$0xff]   ;;  %v1038_v2 = vmov 0.0   ;;  %v762_v3 = vld [vmem:[%s315_s11 + $0x8] sm:$0xff]   ;;  %vm1039_vm0 = vmmov 0   ;;  %v1040_v5 = vmov 0   ;;  %vm387_vm1 = vcmask 261120  }
  0xb4   : > { %640 = vmatprep.subr.bf16.mxu0 %v1038_v2  ;;  %644 = vmatprep.mubr.msk.bf16.mxu0 %vm1039_vm0, %v1038_v2  ;;  %v432_v4 = vld [vmem:[#allocation10] sm:$0xff]  ;;  %v431_v6 = vld [vmem:[#allocation8] sm:$0xff]  ;;  %v370_v7 = vld [vmem:[#allocation2] sm:$0xf]  ;;  %v436_v11 = vlaneseq  ;;  %s629_s29 = sshll.u32 %s1019_s24, 7  ;;  %s1041_s13 = smov [#allocation12]  }
  0xb5   : > { %641 = vmatpush3.bf16.msra.mxu0 %v761_v1  ;;  %760 = vset.pattern.permute.xlu0 %v1040_v5  ;;  %v440_v16 = vstv %s629_s29  ;;  %v630_v18 = vld [vmem:[%s1292_s30] ss:$0 sm:$0xff]  ;;  %s485_s18 = sshll.u32 %s1041_s13, 4  ;;  %v457_v22 = vld [vmem:[#allocation11] sm:$0xff]  ;;  %s1042_s21 = smov [#allocation11]   ;;  %s486_s18 = int_to_ptr.vmem [resolvable:$true] %s485_s18 }
  0xb6   : > { %642 = vmatprep.subr.bf16.mxu0 %v1038_v2  ;;  %443 = vperm.xlu0 %760, %v432_v4   ;;  %v437_v14 = vand.u32 127, %v436_v11  ;;  %v460_v20 = vld [vmem:[#allocation12] sm:$0xff]  ;;  %s472_s10 = sshll.u32 %s1042_s21, 4  ;;  %p696_p5 = scmp.eq.s32.totalorder %s1107_s27, 1  ;;  %s1302_s10 = int_to_ptr.vmem [resolvable:$true] %s472_s10 }
  0xb7   : > { %s909_s24 = scalar_lea.vmem %s486_s18, 128  ;;  %p916_p2 = scmp.lt.s32.totalorder %s486_s18, %s486_s18 }
  0xb8   : > { %v441_v17 = vadd.s32 %v440_v16, %v437_v14  ;;  %p910_p7 = scmp.ne.s32.totalorder %s486_s18, %s909_s24  ;;  %p917_p10 = scmp.lt.s32.totalorder %s909_s24, %s909_s24 }
  0xb9   : > { %643 = vmatpush3.bf16.msra.mxu0 %v762_v3 }
  0xba   : > { %449 = vperm.xlu0 %760, %v431_v6   ;;  %p911_p0 = pnand %p910_p7, %p696_p5  ;;  %p918_p11 = por %p917_p10, %p916_p2 }
  0xbc   : > { %645 = vmatmul.mubr.msk.bf16.vlgmr.msra.gmra.mrb[0].mxu0 %vm387_vm1, %v370_v7  ;;  %p912_p13 = pneg %p911_p0 }
  0xbe   : > { %p919_p9 = pnand %p918_p11, %p912_p13 }
 0x135   : > { %v444_v15 = vpop.permute.xlu0 %443 }
 0x136   : > { %vm445_vm2 = vcmp.eq.s32.totalorder %v441_v17, %v444_v15 }
 0x139   : > { %v450_v19 = vpop.permute.xlu0 %449 }
 0x13a   : > { %vm455_vm3 = vcmp.eq.s32.totalorder %v450_v19, %v630_v18 }
 0x18f   : > { %v425_v8 = vpop.f32.mrb[0].mxu0 }
 0x190   : > { %v438_v9 = vmul.f32 1.442695, %v425_v8  ;;  %v646_v10 = vpop.f32.mrb[1].mxu0 }
 0x191   : > { %v428_v12 = vpop.f32.mrb[2].mxu0 }
 0x192   : > { %763 = vpow2.f32 %v438_v9  ;;  %v647_v13 = vpop.f32.mrb[3].mxu0 }
 0x19c   : > { %v764_v21 = vpop.eup %763 }
 0x19d   : > { %v446_v23 = vsel %vm445_vm2, 0.0, %v764_v21 }
 0x19e   : > { %v461_v24 = vadd.f32 %v460_v20, %v446_v23  ;;  %v456_v25 = vsel %vm455_vm3, %v446_v23, 0.0 }
 0x19f   : > { %v458_v26 = vadd.f32 %v457_v22, %v456_v25 }
 0x1a0   : > { %462 = vst [vmem:[#allocation12] sm:$0xff] %v461_v24 }
 0x1a1   : > { %459 = vst [vmem:[#allocation11] sm:$0xff] %v458_v26 }
 0x1a2   : > { %922 = shalt.err (!%p919_p9)
}
 0x1a3   : > { %s923_s28 = scalar_lea.hbm %s1377_s6, 128 }
 0x1a4   : > { %p924_p3 = scmp.ne.s32.totalorder %s1377_s6, %s923_s28  ;;  %p929_p12 = scmp.lt.u32.totalorder %s923_s28, %s1377_s6 }
 0x1a6   : > { %p925_p6 = pnand %p924_p3, %p696_p5 }
 0x1a8   : > { %p926_p8 = pneg %p925_p6 }
 0x1aa   : > { %p931_p1 = pnand %p929_p12, %p926_p8 }
 0x1ac   : > { %934 = shalt.err (!%p931_p1)
}
 0x1ad   : > { %667 = dma.vmem_to_hbm [thread:$0]  (%p696_p5), %s486_s18, 128, %s1377_s6, [#allocation13]  }
 0x1ae   : > { %s935_s20 = scalar_lea.vmem %s1302_s10, 128  ;;  %p942_p13 = scmp.lt.s32.totalorder %s1302_s10, %s1302_s10 }
 0x1af   : > { %p936_p4 = scmp.ne.s32.totalorder %s1302_s10, %s935_s20  ;;  %p943_p2 = scmp.lt.s32.totalorder %s935_s20, %s935_s20 }
 0x1b1   : > { %p937_p7 = pnand %p936_p4, %p696_p5  ;;  %p944_p10 = por %p943_p2, %p942_p13 }
 0x1b3   : > { %p938_p0 = pneg %p937_p7 }
 0x1b5   : > { %p945_p11 = pnand %p944_p10, %p938_p0 }
 0x1b7   : > { %948 = shalt.err (!%p945_p11)
}
 0x1b8   : > { %s949_s8 = scalar_lea.hbm %s1376_s5, 128 }
 0x1b9   : > { %p950_p9 = scmp.ne.s32.totalorder %s1376_s5, %s949_s8  ;;  %p955_p8 = scmp.lt.u32.totalorder %s949_s8, %s1376_s5 }
 0x1bb   : > { %p951_p3 = pnand %p950_p9, %p696_p5 }
 0x1bd   : > { %p952_p6 = pneg %p951_p3 }
 0x1bf   : > { %p957_p12 = pnand %p955_p8, %p952_p6 }
 0x1c1   : > { %960 = shalt.err (!%p957_p12)
}
 0x1c2   : > { %665 = dma.vmem_to_hbm [thread:$0]  (%p696_p5), %s1302_s10, 128, %s1376_s5, [#allocation4]  }
 0x1c3   : > { %998 = dma.done.wait (%p696_p5), [#allocation4], 128  }
 0x1c4   : > { %1000 = vsyncadd (%p696_p5), [#allocation4], 4294967168 }
 0x1c5   : > { %1002 = dma.done.wait (%p696_p5), [#allocation13], 128  }
 0x1c6   : > { %1004 = vsyncadd (%p696_p5), [#allocation13], 4294967168 }
 0x1c7 PF: > { %s24_s26 = sadd.s32 1, %s1027_s26   ;;  %s1411_s24 = sld [smem:[#allocation20_spill]] }
 0x1c8   : > { %p21_p1 = scmp.ge.s32.totalorder %s24_s26, 4   ;;  %s1412_s10 = sld [smem:[#allocation19_spill]] }
 0x1c9   : > { %s1413_s21 = smov %s1011_s22  ;;  %s1414_s22 = smov %s1015_s23 }
 0x1ca   :  { %23 = sbr.rel (!%p21_p1) target bundleno = 11 (0xb), region = 115 }
 0x1cd   : > { %s1415_s23 = smov %s1411_s24  ;;  %s1416_s24 = smov %s1023_s25 }
 0x1ce   : > { %s1417_s25 = smov %s1412_s10 }
 0x1d1   :  { %502 = vsyncpa [#allocation3], 1 }
 0x1d2   :  { %504 = vsyncpa [#allocation3 + $0x1], 1 }
 0x1d3   :  { %505 = vsyncpa [#allocation6], 1 }
 0x1d4   :  { %507 = vsyncpa [#allocation6 + $0x1], 1 }
 0x1d5   :  { %508 = vsyncpa [#allocation9], 1 }
 0x1d6   :  { %509 = vsyncpa [#allocation4], 1 }
 0x1d7   :  { %511 = vsyncpa [#allocation4 + $0x1], 1 }
 0x1d8   :  { %512 = vsyncpa [#allocation13], 1 }

</bundles_post_ra>
